<compile_context>
chip_gen: v7x
topology: tpu7x:2x2x1
jax: 0.10.0
libtpu: 0.0.40
codegen_flags: <defaults>
</compile_context>

<pallas_src>
import jax
import jax.numpy as jnp
from jax import lax
from jax.experimental import pallas as pl
from jax.experimental.pallas import tpu as pltpu


def _round_up(x, m):
    return ((x + m - 1) // m) * m


def _choose_block_j(hw, c, itemsize, vmem_budget=16 * 1024 * 1024):
    """Pick the lane-tile width TN (multiple of 128) for the j axis."""
    hw128 = _round_up(hw, 128)
    tn = min(hw128, 512)
    # Shrink until the (double-buffered) working set fits the budget:
    #   2 * (output tile hw*tn + feat_b tile c*tn + resident feat_a c*hw128)
    while tn > 128:
        need = 2 * (hw * tn + c * tn + c * hw128) * itemsize
        if need <= vmem_budget:
            break
        tn -= 128
    return tn


def _feature_correlation_kernel(a_ref, b_ref, o_ref):
    # a_ref: (c, hw)   feat_a flattened with k = wk*h + hk   (resident over j)
    # b_ref: (c, TN)   j-tile of feat_b flattened with j = hj*w + wj
    # o_ref: (hw, TN)  o[k, j] = sum_c a[c, k] * b[c, j]
    o_ref[...] = lax.dot_general(
        a_ref[...], b_ref[...],
        dimension_numbers=(((0,), (0,)), ((), ())),
        preferred_element_type=jnp.float32,
    ).astype(o_ref.dtype)


def feature_correlation(feat_a, feat_b, block_j=None):
    """Pallas implementation of mmfashion FeatureCorrelation.forward."""
    bs, c, h, w = feat_a.shape
    assert feat_b.shape == (bs, c, h, w)
    hw = h * w
    dtype = feat_a.dtype
    itemsize = jnp.dtype(dtype).itemsize

    # Glue: reproduce torch's flatten orders (cheap vs the hw^2 output).
    # torch: feat_a.transpose(2, 3).view(bs, c, h*w)  -> k = wk*h + hk
    a_flat = jnp.transpose(feat_a, (0, 1, 3, 2)).reshape(bs, c, hw)
    # torch: feat_b.view(bs, c, h*w)                  -> j = hj*w + wj
    b_flat = feat_b.reshape(bs, c, hw)

    # Lane tile and 128-aligned padded j extent.
    tn = block_j if block_j is not None else _choose_block_j(hw, c, itemsize)
    hw_pad = _round_up(hw, tn)
    if hw_pad != hw:
        b_flat = jnp.pad(b_flat, ((0, 0), (0, 0), (0, hw_pad - hw)))
    n_j = hw_pad // tn

    cost = pl.CostEstimate(
        flops=2 * bs * hw * hw_pad * c,
        transcendentals=0,
        bytes_accessed=(2 * bs * c * hw * itemsize + bs * hw * hw_pad * itemsize),
    )

    out = pl.pallas_call(
        _feature_correlation_kernel,
        out_shape=jax.ShapeDtypeStruct((bs, hw, hw_pad), dtype),
        grid=(bs, n_j),
        in_specs=[
            pl.BlockSpec((None, c, hw), lambda b, j: (b, 0, 0)),   # feat_a (resident over j)
            pl.BlockSpec((None, c, tn), lambda b, j: (b, 0, j)),   # feat_b j-tile
        ],
        out_specs=pl.BlockSpec((None, hw, tn), lambda b, j: (b, 0, j)),
        compiler_params=pltpu.CompilerParams(
            dimension_semantics=("parallel", "parallel"),
            vmem_limit_bytes=48 * 1024 * 1024,
        ),
        cost_estimate=cost,
    )(a_flat, b_flat)

    if hw_pad != hw:
        out = out[:, :, :hw]

    # Output is out[b, k, j]; split j into (hj, wj) row-major -> (bs, hw, h, w).
    return out.reshape(bs, hw, h, w)


def _feature_correlation_ref(feat_a, feat_b):
    """Pure-JAX reference mirroring the PyTorch code exactly."""
    bs, c, h, w = feat_a.shape
    hw = h * w
    fa = jnp.transpose(feat_a, (0, 1, 3, 2)).reshape(bs, c, hw)   # (bs, c, hw)
    fb = jnp.transpose(feat_b.reshape(bs, c, hw), (0, 2, 1))      # (bs, hw, c)
    feat_mul = jnp.einsum('bjc,bck->bjk', fb, fa)                 # bmm
    corr = feat_mul.reshape(bs, h, w, hw)
    corr = jnp.transpose(corr, (0, 1, 3, 2))                      # transpose(2,3)
    corr = jnp.transpose(corr, (0, 2, 1, 3))                      # transpose(1,2)
    return corr


if __name__ == "__main__":
    key = jax.random.PRNGKey(0)

    def _check(bs, c, h, w, block_j=None, dtype=jnp.float32):
        ka, kb = jax.random.split(jax.random.fold_in(key, h * 1000 + w))
        feat_a = jax.random.normal(ka, (bs, c, h, w), dtype=dtype)
        feat_b = jax.random.normal(kb, (bs, c, h, w), dtype=dtype)
        out = jax.block_until_ready(
            feature_correlation(feat_a, feat_b, block_j=block_j))
        ref = _feature_correlation_ref(feat_a, feat_b)
        assert out.shape == (bs, h * w, h, w), out.shape
        assert jnp.allclose(out, ref, atol=1e-4, rtol=1e-4), (bs, c, h, w, block_j)

    # Primary small test (aligned hw = 256, auto tile size).
    _check(2, 4, 16, 16)
    # Exercise the multi-j-tile pipeline path explicitly (2 tiles of 128).
    _check(2, 4, 16, 16, block_j=128)
    # Exercise the 128-padding path (hw = 192, a realistic GMM spatial size).
    _check(2, 4, 16, 12)

    print("KERNEL_OK")
</pallas_src>

<mosaic_0001>
module attributes {stable_mosaic.version = 11 : i64} {
  func.func @_feature_correlation_kernel(%arg0: i32, %arg1: i32, %arg2: memref<1x4x256xf32, #tpu.memory_space<vmem>>, %arg3: memref<1x4x256xf32, #tpu.memory_space<vmem>>, %arg4: memref<1x256x256xf32, #tpu.memory_space<vmem>>) attributes {dimension_semantics = [#tpu.dimension_semantics<parallel>, #tpu.dimension_semantics<parallel>], iteration_bounds = array<i64: 2, 1>, scalar_prefetch = 0 : i64, scratch_operands = 0 : i64, tpu.core_type = #tpu.core_type<tc>, window_params = [{transform_indices = @transform_0, window_bounds = array<i64: 1, 4, 256>}, {transform_indices = @transform_1, window_bounds = array<i64: 1, 4, 256>}, {transform_indices = @transform_2, window_bounds = array<i64: 1, 256, 256>}]} {
    %c0 = arith.constant 0 : index
    %c0_0 = arith.constant 0 : index
    %c0_1 = arith.constant 0 : index
    %0 = vector.load %arg2[%c0, %c0_0, %c0_1] : memref<1x4x256xf32, #tpu.memory_space<vmem>>, vector<1x4x256xf32>
    %1 = vector.shape_cast %0 : vector<1x4x256xf32> to vector<4x256xf32>
    %c0_2 = arith.constant 0 : index
    %c0_3 = arith.constant 0 : index
    %c0_4 = arith.constant 0 : index
    %2 = vector.load %arg3[%c0_2, %c0_3, %c0_4] : memref<1x4x256xf32, #tpu.memory_space<vmem>>, vector<1x4x256xf32>
    %3 = vector.shape_cast %2 : vector<1x4x256xf32> to vector<4x256xf32>
    %cst = arith.constant dense<0.000000e+00> : vector<256x256xf32>
    %4 = tpu.matmul %1, %3, %cst {dimension_numbers = #tpu.dot_dimension_numbers<[0], [0], [1], [1], [0, 1, 1, 1], [], []>} : vector<4x256xf32>, vector<4x256xf32>, vector<256x256xf32> -> vector<256x256xf32>
    %c0_5 = arith.constant 0 : index
    %c0_6 = arith.constant 0 : index
    %c0_7 = arith.constant 0 : index
    %5 = vector.load %arg4[%c0_5, %c0_6, %c0_7] : memref<1x256x256xf32, #tpu.memory_space<vmem>>, vector<1x256x256xf32>
    %6 = vector.shape_cast %5 : vector<1x256x256xf32> to vector<256x256xf32>
    %7 = vector.shape_cast %4 : vector<256x256xf32> to vector<1x256x256xf32>
    tpu.vector_store %arg4[%c0_5, %c0_6, %c0_7], %7 {strides = array<i32>} : memref<1x256x256xf32, #tpu.memory_space<vmem>>, vector<1x256x256xf32>,
    return
  }
  func.func @transform_0(%arg0: i32, %arg1: i32) -> (i32, i32, i32) {
    %c0_i32 = arith.constant 0 : i32
    %c0_i32_0 = arith.constant 0 : i32
    %c0_i32_1 = arith.constant 0 : i32
    return %arg0, %c0_i32, %c0_i32_0 : i32, i32, i32
  }
  func.func @transform_1(%arg0: i32, %arg1: i32) -> (i32, i32, i32) {
    %c0_i32 = arith.constant 0 : i32
    %c0_i32_0 = arith.constant 0 : i32
    return %arg0, %c0_i32, %arg1 : i32, i32, i32
  }
  func.func @transform_2(%arg0: i32, %arg1: i32) -> (i32, i32, i32) {
    %c0_i32 = arith.constant 0 : i32
    %c0_i32_0 = arith.constant 0 : i32
    return %arg0, %c0_i32, %arg1 : i32, i32, i32
  }
}

</mosaic_0001>

<bundles_post_ra>
// kernel: tpu_custom_call.1
= control target key start
LH: loop header
LB: loop body
LE: loop exit
PB: predicated region body
PF: predicated region fallthrough
CT: control target
= control target key end

     0   :  { %7 = vsyncpa [#allocation3], 0  ;;  %s1491_s0 = inlined_call_operand.hbm [shape: f32[2,4,256], index: 0, kind: input, shape index: {}]   ;;  %s1492_s1 = inlined_call_operand.hbm [shape: f32[2,4,256], index: 1, kind: input, shape index: {}]   ;;  %s1493_s2 = inlined_call_operand.hbm [shape: f32[2,256,256], index: 2, kind: output, shape index: {}]  }
   0x1   :  { %9 = vsyncpa [#allocation3 + $0x1], 0 }
   0x2   :  { %10 = vsyncpa [#allocation6], 0 }
   0x3   :  { %12 = vsyncpa [#allocation6 + $0x1], 0 }
   0x4   :  { %13 = vsyncpa [#allocation4], 0 }
   0x5   :  { %15 = vsyncpa [#allocation4 + $0x1], 0  ;;  %s1137_s9 = smov 0   ;;  %s1139_s10 = smov 0  }
   0x6   :  { %s1141_s11 = smov 0   ;;  %s1143_s12 = smov 0  }
   0x7   :  { %s1145_s13 = smov 0   ;;  %s1147_s14 = smov 0  }
   0x8 LB: > { %s838_s15 = sadd.s32 4294967295, %s1114_s14   ;;  %s839_s16 = sadd.s32 4294967294, %s1114_s14   ;;  %s1114_s14 = sphi %s1147_s14, %s21_s14   ;;  %s1110_s13 = sphi %s1145_s13, %s1513_s13   ;;  %s1106_s12 = sphi %s1143_s12, %s1512_s12   ;;  %s1102_s11 = sphi %s1141_s11, %s1511_s11   ;;  %s1098_s10 = sphi %s1139_s10, %s1510_s10   ;;  %s1094_s9 = sphi %s1137_s9, %s1509_s9  }
   0x9   : > { %s33_s17 = sadd.s32 1, %s1110_s13  ;;  %s40_s18 = sadd.s32 1, %s1102_s11 }
   0xa   : > { %p35_p0 = scmp.ge.s32.totalorder %s33_s17, 2  ;;  %p47_p1 = scmp.ne.s32.totalorder %s1102_s11, %s1098_s10 }
   0xb   : > { %p48_p2 = scmp.eq.s32.totalorder %s1114_s14, 0  ;;  %p53_p3 = scmp.ne.s32.totalorder %s1098_s10, %s1094_s9 }
   0xc   : > { %s1515_s17 = smov (%p35_p0, %s33_s17), 0  ;;  %p54_p5 = scmp.eq.s32.totalorder %s838_s15, 0 }
   0xd   : > { %p1178_p4 = por %p48_p2, %p47_p1  ;;  %s37_s20 = ssub.s32 %s1110_s13, %s1515_s17 }
   0xe   : > { %p107_p6 = scmp.eq.s32.totalorder %s838_s15, 1  ;;  %p38_p7 = scmp.eq.s32.totalorder %s37_s20, 0 }
   0xf   : > { %p1184_p8 = por %p54_p5, %p53_p3  ;;  %p113_p10 = scmp.eq.s32.totalorder %s839_s16, 1 }
  0x10   : > { %p1188_p9 = por %p107_p6, %p47_p1  ;;  %p913_p13 = scmp.lt.s32.totalorder %s1114_s14, 2 }
  0x11   : > { %s1497_s21 = scalar_select %p1184_p8, 1, 0 }
  0x12   : > { %s1498_s22 = scalar_select %p1188_p9, 1, 0 }
  0x13   : > { %s1193_s23 = scalar_select %p38_p7, %s1102_s11, %s40_s18  }
  0x14   : > { %p1195_p11 = por %p113_p10, %p53_p3  ;;  %s1202_s25 = sand.u32 1, %s1102_s11  }
  0x15   : > { %s842_s26 = sshll.u32 %s1202_s25, 3  ;;  %s891_s27 = sshll.u32 %s1110_s13, 7 }
  0x16   : > { %s1499_s24 = scalar_select %p1195_p11, 1, 0 }
  0x17   : > { %s1211_s30 = scalar_lea.hbm %s1491_s0, %s891_s27  ;;  %s137_s3 = scalar_lea.vmem [#allocation2], %s842_s26 }
  0x18   : > { %s145_s4 = sshll.u32 %s137_s3, 4  ;;  %p1219_p0 = pnand %p913_p13, %p1178_p4  ;;  %s1215_s4 = int_to_ptr.vmem [resolvable:$true] %s145_s4 }
  0x19   : > { %s134_s6 = scalar_lea.sflag [#allocation3], %s1202_s25  ;;  %s968_s7 = scalar_lea.hbm %s1211_s30, 128 }
  0x1a   : > { %p969_p3 = scmp.ne.s32.totalorder %s1211_s30, %s968_s7  ;;  %p970_p5 = pneg %p1219_p0 }
  0x1b   : > { %s973_s16 = scalar_lea.hbm %s1491_s0, 256  ;;  %p974_p4 = scmp.lt.u32.totalorder %s1211_s30, %s1491_s0 }
  0x1c   : > { %p971_p6 = pnand %p970_p5, %p969_p3  ;;  %p975_p10 = scmp.lt.u32.totalorder %s973_s16, %s968_s7 }
  0x1d   : > { %p977_p12 = scmp.lt.u32.totalorder %s968_s7, %s1211_s30 }
  0x1e   : > { %p972_p7 = pneg %p971_p6  ;;  %p976_p13 = por %p975_p10, %p974_p4 }
  0x20   : > { %p978_p1 = por %p977_p12, %p976_p13 }
  0x22   : > { %p979_p2 = pnand %p978_p1, %p972_p7 }
  0x24   : > { %982 = shalt.err (!%p979_p2)
}
  0x25   : > { %s983_s20 = scalar_lea.vmem %s1215_s4, 128  ;;  %s1116_s28 = smov [#allocation2]  }
  0x26   : > { %p984_p3 = scmp.ne.s32.totalorder %s1215_s4, %s983_s20  ;;  %s988_s29 = sshll.u32 %s1116_s28, 4  ;;  %s989_s29 = int_to_ptr.vmem [resolvable:$false] %s988_s29 }
  0x27   : > { %s990_s3 = scalar_lea.vmem %s989_s29, 256  ;;  %p991_p9 = scmp.lt.s32.totalorder %s1215_s4, %s989_s29 }
  0x28   : > { %p986_p6 = pnand %p984_p3, %p970_p5  ;;  %p992_p4 = scmp.lt.s32.totalorder %s990_s3, %s983_s20 }
  0x2a   : > { %p987_p11 = pneg %p986_p6  ;;  %p993_p10 = por %p992_p4, %p991_p9 }
  0x2c   : > { %p994_p12 = pnand %p993_p10, %p987_p11 }
  0x2e   : > { %997 = shalt.err (!%p994_p12)
}
  0x2f   : > { %905 = dma.hbm_to_vmem [thread:$0]  (!%p1219_p0), %s1211_s30, 128, %s1215_s4, %s134_s6  }
  0x30   : > { %p1501_p1 = scmp.lt.s32.totalorder %s1114_s14, 3  ;;  %p1502_p2 = scmp.ge.s32.totalorder %s1114_s14, 1 }
  0x31   : > { %s1264_s16 = scalar_lea.hbm %s1492_s1, %s891_s27  ;;  %s156_s18 = scalar_lea.vmem [#allocation5], %s842_s26 }
  0x32   : > { %p1255_p7 = pnand %p1502_p2, %p1501_p1  ;;  %s166_s19 = sshll.u32 %s156_s18, 4  ;;  %s167_s19 = int_to_ptr.vmem [resolvable:$true] %s166_s19 }
  0x33   : > { %s153_s30 = scalar_lea.sflag [#allocation6], %s1202_s25  ;;  %s998_s4 = scalar_lea.hbm %s1264_s16, 128 }
  0x34   : > { %s1503_s7 = scalar_select %p1255_p7, 1, 0 }
  0x35   : > { %p999_p9 = scmp.ne.s32.totalorder %s1264_s16, %s998_s4  ;;  %s1003_s27 = scalar_lea.hbm %s1492_s1, 256 }
  0x36   : > { %p1004_p3 = scmp.lt.u32.totalorder %s1264_s16, %s1492_s1  ;;  %p1005_p6 = scmp.lt.u32.totalorder %s1003_s27, %s998_s4 }
  0x37   : > { %p1001_p11 = pnand %p999_p9, %p970_p5  ;;  %p1007_p10 = scmp.lt.u32.totalorder %s998_s4, %s1264_s16 }
  0x38   : > { %p1006_p4 = por %p1005_p6, %p1004_p3 }
  0x39   : > { %p1002_p13 = pneg %p1001_p11 }
  0x3a   : > { %p1008_p12 = por %p1007_p10, %p1006_p4 }
  0x3c   : > { %p1009_p1 = pnand %p1008_p12, %p1002_p13 }
  0x3e   : > { %1012 = shalt.err (!%p1009_p1)
}
  0x3f   : > { %s1013_s25 = scalar_lea.vmem %s167_s19, 128  ;;  %s1117_s26 = smov [#allocation5]  }
  0x40   : > { %p1014_p2 = scmp.ne.s32.totalorder %s167_s19, %s1013_s25  ;;  %s1018_s3 = sshll.u32 %s1117_s26, 4  ;;  %s1019_s3 = int_to_ptr.vmem [resolvable:$false] %s1018_s3 }
  0x41   : > { %s1020_s8 = scalar_lea.vmem %s1019_s3, 256  ;;  %p1021_p8 = scmp.lt.s32.totalorder %s167_s19, %s1019_s3 }
  0x42   : > { %p1016_p9 = pnand %p1014_p2, %p970_p5  ;;  %p1022_p7 = scmp.lt.s32.totalorder %s1020_s8, %s1013_s25 }
  0x44   : > { %p1017_p11 = pneg %p1016_p9  ;;  %p1023_p3 = por %p1022_p7, %p1021_p8 }
  0x46   : > { %p1024_p6 = pnand %p1023_p3, %p1017_p11 }
  0x48   : > { %1027 = shalt.err (!%p1024_p6)
}
  0x49   : > { %908 = dma.hbm_to_vmem [thread:$0]  (!%p1219_p0), %s1264_s16, 128, %s167_s19, %s153_s30  }
  0x4a   : > { %p1504_p13 = scmp.ne.s32.totalorder %s1503_s7, 0 }
  0x4b   : > { %s1291_s15 = sand.u32 (!%p1504_p13), 1, %s1098_s10   ;;  %p1505_p5 = scmp.ne.s32.totalorder (!%p1504_p13), %s1497_s21, 0 }
  0x4c   : > { %175 = sbr.rel (%p1504_p13) target bundleno = 569 (0x239), region = 28  ;;  %s849_s18 = sshll.u32 (!%p1504_p13), %s1291_s15, 3 }
  0x4d   : > { %s178_s4 = scalar_lea.sflag (!%p1504_p13), [#allocation3], %s1291_s15  ;;  %s181_s6 = scalar_lea.vmem (!%p1504_p13), [#allocation2], %s849_s18 }
  0x53   : > { %1081 = dma.done.wait (%p1505_p5), %s178_s4, 128  }
  0x54   : > { %1083 = vsyncadd (%p1505_p5), %s178_s4, 4294967168  ;;  %s187_s5 = scalar_lea.sflag [#allocation6], %s1291_s15  ;;  %s190_s16 = scalar_lea.vmem [#allocation5], %s849_s18 }
  0x55   : > { %1085 = dma.done.wait (%p1505_p5), %s187_s5, 128  }
  0x56   : > { %1087 = vsyncadd (%p1505_p5), %s187_s5, 4294967168  ;;  %v1118_v0 = vmov 0.0   ;;  %v218_v1 = vld [vmem:[%s181_s6] sm:$0xff]  ;;  %v219_v2 = vld [vmem:[%s190_s16] sm:$0xff]  ;;  %vm386_vm0 = vcmask 1043456   ;;  %vm289_vm1 = vcmask 31744  }
  0x57   : > { %455 = vmatprep.mubr.f32.mxu0 %v1118_v0  ;;  %551 = vmatprep.mubr.f32.mxu1 %v1118_v0  ;;  %v288_v3 = vcombine.high %v219_v2, %v219_v2  ;;  %v221_v4 = vcombine.high %v218_v1, %v218_v1  ;;  %s851_s21 = sshll.u32 %s1291_s15, 9  ;;  %s893_s19 = sshll.u32 %s1106_s12, 13 }
  0x58   : > { %223 = vxpose.xlu0.b32.start.end [1/1] (short) %v218_v1, 128  ;;  %s1369_s7 = scalar_lea.vmem [#allocation7], %s851_s21  ;;  %s1438_s28 = scalar_lea.hbm %s1493_s2, %s893_s19 }
  0x59   : > { %852 = vmatprep.subr.msk.mxu0 %vm386_vm0, %v288_v3  ;;  %894 = vmatprep.subr.msk.mxu1 %vm386_vm0, %v288_v3  ;;  %s728_s30 = sshll.u32 %s1369_s7, 4  ;;  %s713_s29 = scalar_lea.sflag [#allocation4], %s1291_s15  ;;  %s1440_s30 = int_to_ptr.vmem [resolvable:$true] %s728_s30 }
  0x5a   : > { %853 = vmatpush1.msk.msra.mxu0 %vm386_vm0, %v219_v2  ;;  %895 = vmatpush1.msk.msra.mxu1 %vm386_vm0, %v219_v2  ;;  %s1028_s12 = scalar_lea.vmem %s1440_s30, 8192  ;;  %p1506_p0 = scmp.ne.s32.totalorder %s1498_s22, 0 }
  0x5b   : > { %p1029_p8 = scmp.ne.s32.totalorder %s1440_s30, %s1028_s12  ;;  %s1119_s25 = smov [#allocation7]  }
  0x5c   : > { %s1032_s26 = sshll.u32 %s1119_s25, 4  ;;  %s1033_s26 = int_to_ptr.vmem [resolvable:$false] %s1032_s26 }
  0x5d   : > { %p1030_p7 = pnand %p1029_p8, %p1506_p0  ;;  %s1034_s3 = scalar_lea.vmem %s1033_s26, 16384 }
  0x5e   : > { %p1035_p10 = scmp.lt.s32.totalorder %s1440_s30, %s1033_s26  ;;  %p1036_p12 = scmp.lt.s32.totalorder %s1034_s3, %s1028_s12 }
  0x5f   : > { %p1031_p4 = pneg %p1030_p7 }
  0x60   : > { %p1037_p1 = por %p1036_p12, %p1035_p10 }
  0x62   : > { %p1038_p2 = pnand %p1037_p1, %p1031_p4 }
  0x95   : > { %255 = vxpose.xlu0.b32.start.end [1/1] (short) %v221_v4, 128 }
  0xd8   : > { %v239_v5 = vpop.trf.xlu0 }
  0xd9   : > { %854 = vmatmul.mubr.msk.f32.vlgmr.msra.gmra.mrb[0].mxu0 %vm289_vm1, %v239_v5 }
  0xda   : > { %461 = vmatprep.mubr.f32.mxu0 %v1118_v0 }
  0xdc   : > { %v240_v6 = vpop.trf.xlu0 }
  0xdd   : > { %855 = vmatmul.mubr.msk.f32.gmra.mrb[2].mxu0 %vm289_vm1, %v240_v6 }
  0xde   : > { %467 = vmatprep.mubr.f32.mxu0 %v1118_v0 }
  0xe0   : > { %v241_v7 = vpop.trf.xlu0 }
  0xe1   : > { %856 = vmatmul.mubr.msk.f32.gmra.mrb[4].mxu0 %vm289_vm1, %v241_v7 }
  0xe2   : > { %473 = vmatprep.mubr.f32.mxu0 %v1118_v0 }
  0xe4   : > { %v242_v8 = vpop.trf.xlu0 }
  0xe5   : > { %857 = vmatmul.mubr.msk.f32.gmra.mrb[6].mxu0 %vm289_vm1, %v242_v8 }
  0xe6   : > { %479 = vmatprep.mubr.f32.mxu0 %v1118_v0 }
  0xe8   : > { %v243_v9 = vpop.trf.xlu0 }
  0xe9   : > { %858 = vmatmul.mubr.msk.f32.gmra.mrb[8].mxu0 %vm289_vm1, %v243_v9 }
  0xea   : > { %485 = vmatprep.mubr.f32.mxu0 %v1118_v0 }
  0xec   : > { %v244_v10 = vpop.trf.xlu0 }
  0xed   : > { %859 = vmatmul.mubr.msk.f32.gmra.mrb[10].mxu0 %vm289_vm1, %v244_v10 }
  0xee   : > { %491 = vmatprep.mubr.f32.mxu0 %v1118_v0 }
  0xf0   : > { %v245_v11 = vpop.trf.xlu0 }
  0xf1   : > { %860 = vmatmul.mubr.msk.f32.gmra.mrb[12].mxu0 %vm289_vm1, %v245_v11 }
  0xf2   : > { %497 = vmatprep.mubr.f32.mxu0 %v1118_v0 }
  0xf4   : > { %v246_v12 = vpop.trf.xlu0 }
  0xf5   : > { %861 = vmatmul.mubr.msk.f32.gmra.mrb[14].mxu0 %vm289_vm1, %v246_v12 }
  0xf6   : > { %503 = vmatprep.mubr.f32.mxu0 %v1118_v0 }
  0xf8   : > { %v247_v13 = vpop.trf.xlu0 }
  0xf9   : > { %862 = vmatmul.mubr.msk.f32.gmra.mrb[16].mxu0 %vm289_vm1, %v247_v13 }
  0xfa   : > { %509 = vmatprep.mubr.f32.mxu0 %v1118_v0 }
  0xfc   : > { %v248_v14 = vpop.trf.xlu0 }
  0xfd   : > { %863 = vmatmul.mubr.msk.f32.gmra.mrb[18].mxu0 %vm289_vm1, %v248_v14 }
  0xfe   : > { %515 = vmatprep.mubr.f32.mxu0 %v1118_v0 }
 0x100   : > { %v249_v15 = vpop.trf.xlu0 }
 0x101   : > { %864 = vmatmul.mubr.msk.f32.gmra.mrb[20].mxu0 %vm289_vm1, %v249_v15 }
 0x102   : > { %521 = vmatprep.mubr.f32.mxu0 %v1118_v0 }
 0x104   : > { %v250_v16 = vpop.trf.xlu0 }
 0x105   : > { %865 = vmatmul.mubr.msk.f32.gmra.mrb[22].mxu0 %vm289_vm1, %v250_v16 }
 0x106   : > { %527 = vmatprep.mubr.f32.mxu0 %v1118_v0 }
 0x108   : > { %v251_v17 = vpop.trf.xlu0 }
 0x109   : > { %866 = vmatmul.mubr.msk.f32.gmra.mrb[24].mxu0 %vm289_vm1, %v251_v17 }
 0x10a   : > { %533 = vmatprep.mubr.f32.mxu0 %v1118_v0 }
 0x10c   : > { %v252_v18 = vpop.trf.xlu0 }
 0x10d   : > { %867 = vmatmul.mubr.msk.f32.gmra.mrb[26].mxu0 %vm289_vm1, %v252_v18 }
 0x10e   : > { %539 = vmatprep.mubr.f32.mxu0 %v1118_v0 }
 0x110   : > { %v253_v19 = vpop.trf.xlu0 }
 0x111   : > { %868 = vmatmul.mubr.msk.f32.gmra.mrb[28].mxu0 %vm289_vm1, %v253_v19 }
 0x112   : > { %545 = vmatprep.mubr.f32.mxu0 %v1118_v0 }
 0x114   : > { %v254_v20 = vpop.trf.xlu0 }
 0x115   : > { %869 = vmatmul.mubr.msk.f32.gmra.mrb[30].mxu0 %vm289_vm1, %v254_v20 }
 0x118   : > { %v271_v21 = vpop.trf.xlu0 }
 0x119   : > { %870 = vmatmul.mubr.msk.f32.vlgmr.msra.gmra.mrb[0].mxu1 %vm289_vm1, %v271_v21 }
 0x11a   : > { %557 = vmatprep.mubr.f32.mxu1 %v1118_v0 }
 0x11c   : > { %v272_v22 = vpop.trf.xlu0 }
 0x11d   : > { %871 = vmatmul.mubr.msk.f32.gmra.mrb[2].mxu1 %vm289_vm1, %v272_v22 }
 0x11e   : > { %563 = vmatprep.mubr.f32.mxu1 %v1118_v0 }
 0x120   : > { %v273_v23 = vpop.trf.xlu0 }
 0x121   : > { %872 = vmatmul.mubr.msk.f32.gmra.mrb[4].mxu1 %vm289_vm1, %v273_v23 }
 0x122   : > { %569 = vmatprep.mubr.f32.mxu1 %v1118_v0 }
 0x124   : > { %v274_v24 = vpop.trf.xlu0 }
 0x125   : > { %873 = vmatmul.mubr.msk.f32.gmra.mrb[6].mxu1 %vm289_vm1, %v274_v24 }
 0x126   : > { %575 = vmatprep.mubr.f32.mxu1 %v1118_v0 }
 0x128   : > { %v275_v25 = vpop.trf.xlu0 }
 0x129   : > { %874 = vmatmul.mubr.msk.f32.gmra.mrb[8].mxu1 %vm289_vm1, %v275_v25 }
 0x12a   : > { %581 = vmatprep.mubr.f32.mxu1 %v1118_v0 }
 0x12c   : > { %v276_v26 = vpop.trf.xlu0 }
 0x12d   : > { %875 = vmatmul.mubr.msk.f32.gmra.mrb[10].mxu1 %vm289_vm1, %v276_v26 }
 0x12e   : > { %587 = vmatprep.mubr.f32.mxu1 %v1118_v0 }
 0x130   : > { %v277_v27 = vpop.trf.xlu0 }
 0x131   : > { %876 = vmatmul.mubr.msk.f32.gmra.mrb[12].mxu1 %vm289_vm1, %v277_v27 }
 0x132   : > { %593 = vmatprep.mubr.f32.mxu1 %v1118_v0 }
 0x134   : > { %v278_v28 = vpop.trf.xlu0 }
 0x135   : > { %877 = vmatmul.mubr.msk.f32.gmra.mrb[14].mxu1 %vm289_vm1, %v278_v28 }
 0x136   : > { %599 = vmatprep.mubr.f32.mxu1 %v1118_v0 }
 0x138   : > { %v279_v29 = vpop.trf.xlu0 }
 0x139   : > { %878 = vmatmul.mubr.msk.f32.gmra.mrb[16].mxu1 %vm289_vm1, %v279_v29 }
 0x13a   : > { %605 = vmatprep.mubr.f32.mxu1 %v1118_v0 }
 0x13c   : > { %v280_v30 = vpop.trf.xlu0 }
 0x13d   : > { %879 = vmatmul.mubr.msk.f32.gmra.mrb[18].mxu1 %vm289_vm1, %v280_v30 }
 0x13e   : > { %611 = vmatprep.mubr.f32.mxu1 %v1118_v0 }
 0x140   : > { %v281_v31 = vpop.trf.xlu0 }
 0x141   : > { %880 = vmatmul.mubr.msk.f32.gmra.mrb[20].mxu1 %vm289_vm1, %v281_v31 }
 0x142   : > { %617 = vmatprep.mubr.f32.mxu1 %v1118_v0 }
 0x144   : > { %v282_v32 = vpop.trf.xlu0 }
 0x145   : > { %881 = vmatmul.mubr.msk.f32.gmra.mrb[22].mxu1 %vm289_vm1, %v282_v32 }
 0x146   : > { %623 = vmatprep.mubr.f32.mxu1 %v1118_v0 }
 0x148   : > { %v283_v33 = vpop.trf.xlu0 }
 0x149   : > { %882 = vmatmul.mubr.msk.f32.gmra.mrb[24].mxu1 %vm289_vm1, %v283_v33 }
 0x14a   : > { %629 = vmatprep.mubr.f32.mxu1 %v1118_v0 }
 0x14c   : > { %v284_v34 = vpop.trf.xlu0 }
 0x14d   : > { %883 = vmatmul.mubr.msk.f32.gmra.mrb[26].mxu1 %vm289_vm1, %v284_v34 }
 0x14e   : > { %635 = vmatprep.mubr.f32.mxu1 %v1118_v0 }
 0x150   : > { %v285_v35 = vpop.trf.xlu0 }
 0x151   : > { %884 = vmatmul.mubr.msk.f32.gmra.mrb[28].mxu1 %vm289_vm1, %v285_v35 }
 0x152   : > { %641 = vmatprep.mubr.f32.mxu1 %v1118_v0 }
 0x154   : > { %v286_v36 = vpop.trf.xlu0 }
 0x155   : > { %885 = vmatmul.mubr.msk.f32.gmra.mrb[30].mxu1 %vm289_vm1, %v286_v36 }
 0x1ac   : > { %v457_v37 = vpop.f32.mrb[0].mxu0 }
 0x1ad   : > { %648 = vst [vmem:[%s1369_s7] sm:$0xff] %v457_v37  ;;  %v459_v38 = vpop.f32.mrb[1].mxu0 }
 0x1ae   : > { %649 = vst [vmem:[%s1369_s7 + $0x8] sm:$0xff] %v459_v38 }
 0x1b0   : > { %v463_v39 = vpop.f32.mrb[2].mxu0 }
 0x1b1   : > { %650 = vst [vmem:[%s1369_s7 + $0x10] sm:$0xff] %v463_v39  ;;  %v465_v40 = vpop.f32.mrb[3].mxu0 }
 0x1b2   : > { %651 = vst [vmem:[%s1369_s7 + $0x18] sm:$0xff] %v465_v40 }
 0x1b4   : > { %v469_v41 = vpop.f32.mrb[4].mxu0 }
 0x1b5   : > { %652 = vst [vmem:[%s1369_s7 + $0x20] sm:$0xff] %v469_v41  ;;  %v471_v42 = vpop.f32.mrb[5].mxu0 }
 0x1b6   : > { %653 = vst [vmem:[%s1369_s7 + $0x28] sm:$0xff] %v471_v42 }
 0x1b8   : > { %v475_v43 = vpop.f32.mrb[6].mxu0 }
 0x1b9   : > { %654 = vst [vmem:[%s1369_s7 + $0x30] sm:$0xff] %v475_v43  ;;  %v477_v44 = vpop.f32.mrb[7].mxu0 }
 0x1ba   : > { %655 = vst [vmem:[%s1369_s7 + $0x38] sm:$0xff] %v477_v44 }
 0x1bc   : > { %v481_v45 = vpop.f32.mrb[8].mxu0 }
 0x1bd   : > { %656 = vst [vmem:[%s1369_s7 + $0x40] sm:$0xff] %v481_v45  ;;  %v483_v46 = vpop.f32.mrb[9].mxu0 }
 0x1be   : > { %657 = vst [vmem:[%s1369_s7 + $0x48] sm:$0xff] %v483_v46 }
 0x1c0   : > { %v487_v47 = vpop.f32.mrb[10].mxu0 }
 0x1c1   : > { %658 = vst [vmem:[%s1369_s7 + $0x50] sm:$0xff] %v487_v47  ;;  %v489_v48 = vpop.f32.mrb[11].mxu0 }
 0x1c2   : > { %659 = vst [vmem:[%s1369_s7 + $0x58] sm:$0xff] %v489_v48 }
 0x1c4   : > { %v493_v49 = vpop.f32.mrb[12].mxu0 }
 0x1c5   : > { %660 = vst [vmem:[%s1369_s7 + $0x60] sm:$0xff] %v493_v49  ;;  %v495_v50 = vpop.f32.mrb[13].mxu0 }
 0x1c6   : > { %661 = vst [vmem:[%s1369_s7 + $0x68] sm:$0xff] %v495_v50 }
 0x1c8   : > { %v499_v51 = vpop.f32.mrb[14].mxu0 }
 0x1c9   : > { %662 = vst [vmem:[%s1369_s7 + $0x70] sm:$0xff] %v499_v51  ;;  %v501_v52 = vpop.f32.mrb[15].mxu0 }
 0x1ca   : > { %663 = vst [vmem:[%s1369_s7 + $0x78] sm:$0xff] %v501_v52 }
 0x1cc   : > { %v505_v53 = vpop.f32.mrb[16].mxu0 }
 0x1cd   : > { %664 = vst [vmem:[%s1369_s7 + $0x80] sm:$0xff] %v505_v53  ;;  %v507_v54 = vpop.f32.mrb[17].mxu0 }
 0x1ce   : > { %665 = vst [vmem:[%s1369_s7 + $0x88] sm:$0xff] %v507_v54 }
 0x1d0   : > { %v511_v55 = vpop.f32.mrb[18].mxu0 }
 0x1d1   : > { %666 = vst [vmem:[%s1369_s7 + $0x90] sm:$0xff] %v511_v55  ;;  %v513_v56 = vpop.f32.mrb[19].mxu0 }
 0x1d2   : > { %667 = vst [vmem:[%s1369_s7 + $0x98] sm:$0xff] %v513_v56 }
 0x1d4   : > { %v517_v57 = vpop.f32.mrb[20].mxu0 }
 0x1d5   : > { %668 = vst [vmem:[%s1369_s7 + $0xa0] sm:$0xff] %v517_v57  ;;  %v519_v58 = vpop.f32.mrb[21].mxu0 }
 0x1d6   : > { %669 = vst [vmem:[%s1369_s7 + $0xa8] sm:$0xff] %v519_v58 }
 0x1d8   : > { %v523_v59 = vpop.f32.mrb[22].mxu0 }
 0x1d9   : > { %670 = vst [vmem:[%s1369_s7 + $0xb0] sm:$0xff] %v523_v59  ;;  %v525_v60 = vpop.f32.mrb[23].mxu0 }
 0x1da   : > { %671 = vst [vmem:[%s1369_s7 + $0xb8] sm:$0xff] %v525_v60 }
 0x1dc   : > { %v529_v61 = vpop.f32.mrb[24].mxu0 }
 0x1dd   : > { %672 = vst [vmem:[%s1369_s7 + $0xc0] sm:$0xff] %v529_v61  ;;  %v531_v62 = vpop.f32.mrb[25].mxu0 }
 0x1de   : > { %673 = vst [vmem:[%s1369_s7 + $0xc8] sm:$0xff] %v531_v62 }
 0x1e0   : > { %v535_v63 = vpop.f32.mrb[26].mxu0 }
 0x1e1   : > { %674 = vst [vmem:[%s1369_s7 + $0xd0] sm:$0xff] %v535_v63  ;;  %v537_v0 = vpop.f32.mrb[27].mxu0 }
 0x1e2   : > { %675 = vst [vmem:[%s1369_s7 + $0xd8] sm:$0xff] %v537_v0 }
 0x1e4   : > { %v541_v1 = vpop.f32.mrb[28].mxu0 }
 0x1e5   : > { %676 = vst [vmem:[%s1369_s7 + $0xe0] sm:$0xff] %v541_v1  ;;  %v543_v2 = vpop.f32.mrb[29].mxu0 }
 0x1e6   : > { %677 = vst [vmem:[%s1369_s7 + $0xe8] sm:$0xff] %v543_v2 }
 0x1e8   : > { %v547_v3 = vpop.f32.mrb[30].mxu0 }
 0x1e9   : > { %678 = vst [vmem:[%s1369_s7 + $0xf0] sm:$0xff] %v547_v3  ;;  %v549_v4 = vpop.f32.mrb[31].mxu0 }
 0x1ea   : > { %679 = vst [vmem:[%s1369_s7 + $0xf8] sm:$0xff] %v549_v4 }
 0x1ec   : > { %v553_v5 = vpop.f32.mrb[0].mxu1 }
 0x1ed   : > { %680 = vst [vmem:[%s1369_s7 + $0x100] sm:$0xff] %v553_v5  ;;  %v555_v6 = vpop.f32.mrb[1].mxu1 }
 0x1ee   : > { %681 = vst [vmem:[%s1369_s7 + $0x108] sm:$0xff] %v555_v6 }
 0x1f0   : > { %v559_v7 = vpop.f32.mrb[2].mxu1 }
 0x1f1   : > { %682 = vst [vmem:[%s1369_s7 + $0x110] sm:$0xff] %v559_v7  ;;  %v561_v8 = vpop.f32.mrb[3].mxu1 }
 0x1f2   : > { %683 = vst [vmem:[%s1369_s7 + $0x118] sm:$0xff] %v561_v8 }
 0x1f4   : > { %v565_v9 = vpop.f32.mrb[4].mxu1 }
 0x1f5   : > { %684 = vst [vmem:[%s1369_s7 + $0x120] sm:$0xff] %v565_v9  ;;  %v567_v10 = vpop.f32.mrb[5].mxu1 }
 0x1f6   : > { %685 = vst [vmem:[%s1369_s7 + $0x128] sm:$0xff] %v567_v10 }
 0x1f8   : > { %v571_v11 = vpop.f32.mrb[6].mxu1 }
 0x1f9   : > { %686 = vst [vmem:[%s1369_s7 + $0x130] sm:$0xff] %v571_v11  ;;  %v573_v12 = vpop.f32.mrb[7].mxu1 }
 0x1fa   : > { %687 = vst [vmem:[%s1369_s7 + $0x138] sm:$0xff] %v573_v12 }
 0x1fc   : > { %v577_v13 = vpop.f32.mrb[8].mxu1 }
 0x1fd   : > { %688 = vst [vmem:[%s1369_s7 + $0x140] sm:$0xff] %v577_v13  ;;  %v579_v14 = vpop.f32.mrb[9].mxu1 }
 0x1fe   : > { %689 = vst [vmem:[%s1369_s7 + $0x148] sm:$0xff] %v579_v14 }
 0x200   : > { %v583_v15 = vpop.f32.mrb[10].mxu1 }
 0x201   : > { %690 = vst [vmem:[%s1369_s7 + $0x150] sm:$0xff] %v583_v15  ;;  %v585_v16 = vpop.f32.mrb[11].mxu1 }
 0x202   : > { %691 = vst [vmem:[%s1369_s7 + $0x158] sm:$0xff] %v585_v16 }
 0x204   : > { %v589_v17 = vpop.f32.mrb[12].mxu1 }
 0x205   : > { %692 = vst [vmem:[%s1369_s7 + $0x160] sm:$0xff] %v589_v17  ;;  %v591_v18 = vpop.f32.mrb[13].mxu1 }
 0x206   : > { %693 = vst [vmem:[%s1369_s7 + $0x168] sm:$0xff] %v591_v18 }
 0x208   : > { %v595_v19 = vpop.f32.mrb[14].mxu1 }
 0x209   : > { %694 = vst [vmem:[%s1369_s7 + $0x170] sm:$0xff] %v595_v19  ;;  %v597_v20 = vpop.f32.mrb[15].mxu1 }
 0x20a   : > { %695 = vst [vmem:[%s1369_s7 + $0x178] sm:$0xff] %v597_v20 }
 0x20c   : > { %v601_v21 = vpop.f32.mrb[16].mxu1 }
 0x20d   : > { %696 = vst [vmem:[%s1369_s7 + $0x180] sm:$0xff] %v601_v21  ;;  %v603_v22 = vpop.f32.mrb[17].mxu1 }
 0x20e   : > { %697 = vst [vmem:[%s1369_s7 + $0x188] sm:$0xff] %v603_v22 }
 0x210   : > { %v607_v23 = vpop.f32.mrb[18].mxu1 }
 0x211   : > { %698 = vst [vmem:[%s1369_s7 + $0x190] sm:$0xff] %v607_v23  ;;  %v609_v24 = vpop.f32.mrb[19].mxu1 }
 0x212   : > { %699 = vst [vmem:[%s1369_s7 + $0x198] sm:$0xff] %v609_v24 }
 0x214   : > { %v613_v25 = vpop.f32.mrb[20].mxu1 }
 0x215   : > { %700 = vst [vmem:[%s1369_s7 + $0x1a0] sm:$0xff] %v613_v25  ;;  %v615_v26 = vpop.f32.mrb[21].mxu1 }
 0x216   : > { %701 = vst [vmem:[%s1369_s7 + $0x1a8] sm:$0xff] %v615_v26 }
 0x218   : > { %v619_v27 = vpop.f32.mrb[22].mxu1 }
 0x219   : > { %702 = vst [vmem:[%s1369_s7 + $0x1b0] sm:$0xff] %v619_v27  ;;  %v621_v28 = vpop.f32.mrb[23].mxu1 }
 0x21a   : > { %703 = vst [vmem:[%s1369_s7 + $0x1b8] sm:$0xff] %v621_v28 }
 0x21c   : > { %v625_v29 = vpop.f32.mrb[24].mxu1 }
 0x21d   : > { %704 = vst [vmem:[%s1369_s7 + $0x1c0] sm:$0xff] %v625_v29  ;;  %v627_v30 = vpop.f32.mrb[25].mxu1 }
 0x21e   : > { %705 = vst [vmem:[%s1369_s7 + $0x1c8] sm:$0xff] %v627_v30 }
 0x220   : > { %v631_v31 = vpop.f32.mrb[26].mxu1 }
 0x221   : > { %706 = vst [vmem:[%s1369_s7 + $0x1d0] sm:$0xff] %v631_v31  ;;  %v633_v32 = vpop.f32.mrb[27].mxu1 }
 0x222   : > { %707 = vst [vmem:[%s1369_s7 + $0x1d8] sm:$0xff] %v633_v32 }
 0x224   : > { %v637_v33 = vpop.f32.mrb[28].mxu1 }
 0x225   : > { %708 = vst [vmem:[%s1369_s7 + $0x1e0] sm:$0xff] %v637_v33  ;;  %v639_v34 = vpop.f32.mrb[29].mxu1 }
 0x226   : > { %709 = vst [vmem:[%s1369_s7 + $0x1e8] sm:$0xff] %v639_v34 }
 0x228   : > { %v643_v35 = vpop.f32.mrb[30].mxu1 }
 0x229   : > { %710 = vst [vmem:[%s1369_s7 + $0x1f0] sm:$0xff] %v643_v35  ;;  %v645_v36 = vpop.f32.mrb[31].mxu1 }
 0x22a   : > { %711 = vst [vmem:[%s1369_s7 + $0x1f8] sm:$0xff] %v645_v36 }
 0x22b   : > { %1041 = shalt.err (!%p1038_p2)
}
 0x22c   : > { %s1042_s8 = scalar_lea.hbm %s1438_s28, 8192  ;;  %s1046_s6 = scalar_lea.hbm %s1493_s2, 16384 }
 0x22d   : > { %p1043_p9 = scmp.ne.s32.totalorder %s1438_s28, %s1042_s8  ;;  %p1047_p6 = scmp.lt.u32.totalorder %s1438_s28, %s1493_s2 }
 0x22e   : > { %p1048_p13 = scmp.lt.u32.totalorder %s1046_s6, %s1042_s8  ;;  %p1050_p8 = scmp.lt.u32.totalorder %s1042_s8, %s1438_s28 }
 0x22f   : > { %p1044_p11 = pnand %p1043_p9, %p1506_p0 }
 0x230   : > { %p1049_p5 = por %p1048_p13, %p1047_p6 }
 0x231   : > { %p1045_p3 = pneg %p1044_p11 }
 0x232   : > { %p1051_p7 = por %p1050_p8, %p1049_p5 }
 0x234   : > { %p1052_p4 = pnand %p1051_p7, %p1045_p3 }
 0x236   : > { %1055 = shalt.err (!%p1052_p4)
}
 0x237   : > { %s1120_s21 = smov 256   ;;  %s1121_s7 = smov 16  }
 0x238   : > { %900 = dma.vmem_to_hbm [thread:$0]  (%p1506_p0), %s1440_s30, 8192, %s1438_s28, %s713_s29, %s1120_s21, %s1120_s21, %s1121_s7  }
 0x239 PF: > { %s743_s19 = sand.u32 1, %s1094_s9   ;;  %p1507_p10 = scmp.ne.s32.totalorder %s1499_s24, 0 }
 0x23a   : > { %p1508_p12 = scmp.ge.s32.totalorder %s1114_s14, 2  ;;  %s744_s20 = scalar_lea.sflag [#allocation4], %s743_s19 }
 0x23c   : > { %p910_p1 = pnand %p1508_p12, %p1507_p10 }
 0x23e   : > { %1089 = dma.done.wait (!%p910_p1), %s744_s20, 8192  }
 0x23f   : > { %1091 = vsyncadd (!%p910_p1), %s744_s20, 4294959104  ;;  %s21_s14 = sadd.s32 1, %s1114_s14   ;;  %s1509_s9 = smov %s1098_s10 }
 0x240   : > { %p18_p2 = scmp.ge.s32.totalorder %s21_s14, 4   ;;  %s1510_s10 = smov %s1102_s11 }
 0x241   : > { %s1511_s11 = smov %s1193_s23  ;;  %s1512_s12 = smov %s1110_s13 }
 0x242   : > { %s1513_s13 = smov %s1515_s17  ;;  %20 = sbr.rel (!%p18_p2) target bundleno = 8 (0x8), region = 86 }
 0x249   :  { %749 = vsyncpa [#allocation3], 1 }
 0x24a   :  { %751 = vsyncpa [#allocation3 + $0x1], 1 }
 0x24b   :  { %752 = vsyncpa [#allocation6], 1 }
 0x24c   :  { %754 = vsyncpa [#allocation6 + $0x1], 1 }
 0x24d   :  { %755 = vsyncpa [#allocation4], 1 }
 0x24e   :  { %757 = vsyncpa [#allocation4 + $0x1], 1 }

</bundles_post_ra>
